<compile_context>
chip_gen: v6e
topology: v6e:2x2x1
jax: 0.10.0
libtpu: 0.0.40
codegen_flags: <defaults>
</compile_context>

<pallas_src>
import math

import jax
import jax.numpy as jnp
from jax.experimental import pallas as pl
from jax.experimental.pallas import tpu as pltpu


def _round_up(x, m):
    return ((x + m - 1) // m) * m


def _pick_hw_tiling(HW, B, cap=1024):
    """Padding-aware HW tile: fewest tiles of size <= cap, rounded to 8 sublanes.

    Guarantees >= 2 HW tiles when B == 1 so the grid can shard across the two
    TensorCores on v7x megacore.
    """
    hw8 = _round_up(max(HW, 8), 8)
    n = -(-hw8 // cap)
    if B == 1 and hw8 >= 16:
        n = max(n, 2)
    tm = _round_up(-(-hw8 // n), 8)
    return tm, tm * n


def _modconv_kernel(patch_ref, w_ref, o_ref):
    """out[b, hw_tile, oc_tile] (+)= patches_bf16 @ w_bf16 with f32 accumulation.

    The output block index is constant across the reduction grid axis, so o_ref
    is resident in VMEM and doubles as the f32 accumulator.
    """
    k = pl.program_id(3)
    acc = jnp.dot(patch_ref[...], w_ref[...],
                  preferred_element_type=jnp.float32)

    @pl.when(k == 0)
    def _first():
        o_ref[...] = acc

    @pl.when(k > 0)
    def _rest():
        o_ref[...] += acc


class ModulatedConv2dPallas:
    """Pallas port of hypergan ModulatedConv2d forward (plain conv path)."""

    def __init__(self, in_channel, out_channel, kernel_size, style_dim,
                 demodulate=True, lr_mul=1.0, key=None):
        self.eps = 1e-8
        self.in_channel = in_channel
        self.out_channel = out_channel
        self.kernel_size = kernel_size
        self.style_dim = style_dim
        self.demodulate = demodulate
        self.padding = kernel_size // 2
        fan_in = in_channel * kernel_size ** 2
        self.scale = 1.0 / math.sqrt(fan_in)
        self.lin_scale = 1.0 / math.sqrt(style_dim) * lr_mul
        self.lr_mul = lr_mul

        key = jax.random.PRNGKey(0) if key is None else key
        k1, k2 = jax.random.split(key)
        # mod_weight = nn.Parameter(torch.randn(1, out, in, k, k))
        self.mod_weight = jax.random.normal(
            k1, (1, out_channel, in_channel, kernel_size, kernel_size),
            dtype=jnp.float32)
        # EqualLinear: randn(out_dim=in_channel, in_dim=style_dim) / lr_mul, bias init 1
        self.lin_weight = jax.random.normal(
            k2, (in_channel, style_dim), dtype=jnp.float32) / lr_mul
        self.lin_bias = jnp.ones((in_channel,), dtype=jnp.float32)

    def __call__(self, x, style):
        B, IC, H, W = x.shape
        OC, K = self.out_channel, self.kernel_size
        KKIC = K * K * IC
        HW = H * W
        pad = self.padding

        # ---- tiny f32 JAX preamble: fold modulation + demodulation into the
        # per-batch weight, exactly as the PyTorch forward does ---------------
        s = (jnp.dot(style, self.lin_weight.T,
                     precision=jax.lax.Precision.HIGHEST) * self.lin_scale
             + (self.lin_bias * self.lr_mul)[None, :])                  # (B, IC)
        w = self.scale * self.mod_weight * s[:, None, :, None, None]    # (B, OC, IC, K, K)
        if self.demodulate:
            demod = jax.lax.rsqrt(
                jnp.sum(w * w, axis=(2, 3, 4), keepdims=True) + self.eps)
            w = w * demod
        # w_flat[b, (kh*K + kw)*IC + ic, oc]  -- matches the patches layout.
        w_flat = jnp.transpose(w, (0, 3, 4, 2, 1)).reshape(B, KKIC, OC)

        # ---- wrapper-side im2col, IC-minor layout (HW -> sublanes, K*K*IC -> lanes)
        x_nhwc = jnp.transpose(x, (0, 2, 3, 1))                          # (B, H, W, IC)
        xp = jnp.pad(x_nhwc, ((0, 0), (pad, pad), (pad, pad), (0, 0)))
        cols = [xp[:, kh:kh + H, kw:kw + W, :]
                for kh in range(K) for kw in range(K)]                   # K*K x (B,H,W,IC)
        patches = jnp.stack(cols, axis=3).reshape(B, HW, KKIC)           # (B, HW, KKIC)

        # ---- lane/sublane-aligned padding + tile selection --------------------
        tM, HWp = _pick_hw_tiling(HW, B, cap=1024)
        tK = min(512, _round_up(KKIC, 128))
        Kp = _round_up(KKIC, tK)          # pad reduction up to a multiple of tK
        tN = min(512, _round_up(OC, 128)) # single OC tile for OC <= 512
        OCp = _round_up(OC, tN)

        # bf16 MXU operands (f32 accumulation inside the kernel).
        patches_p = jnp.pad(
            patches, ((0, 0), (0, HWp - HW), (0, Kp - KKIC))).astype(jnp.bfloat16)
        w_p = jnp.pad(
            w_flat, ((0, 0), (0, Kp - KKIC), (0, OCp - OC))).astype(jnp.bfloat16)

        grid = (B, HWp // tM, OCp // tN, Kp // tK)

        out_p = pl.pallas_call(
            _modconv_kernel,
            out_shape=jax.ShapeDtypeStruct((B, HWp, OCp), jnp.float32),
            grid=grid,
            in_specs=[
                pl.BlockSpec((None, tM, tK), lambda b, i, j, k: (b, i, k)),  # patches
                pl.BlockSpec((None, tK, tN), lambda b, i, j, k: (b, k, j)),  # folded w
            ],
            out_specs=pl.BlockSpec((None, tM, tN), lambda b, i, j, k: (b, i, j)),
            compiler_params=pltpu.CompilerParams(
                dimension_semantics=("parallel", "parallel", "parallel",
                                     "arbitrary"),
                vmem_limit_bytes=48 * 1024 * 1024),
        )(patches_p, w_p)

        out = out_p[:, :HW, :OC]
        # Back to NCHW f32 to match the PyTorch module contract (downstream NHWC
        # consumers could take `out` as-is and skip this transpose).
        return out.transpose(0, 2, 1).reshape(B, OC, H, W)


def reference_forward(module, x, style):
    """Pure-JAX replica of the PyTorch forward (upsample=False, downsample=False)."""
    B, IC, H, W = x.shape
    OC, K = module.out_channel, module.kernel_size
    s = jnp.dot(style, module.lin_weight.T,
                precision=jax.lax.Precision.HIGHEST) * module.lin_scale \
        + (module.lin_bias * module.lr_mul)[None, :]                   # (B, IC)
    w = module.scale * module.mod_weight * s[:, None, :, None, None]  # (B, OC, IC, K, K)
    if module.demodulate:
        demod = jax.lax.rsqrt(jnp.sum(w * w, axis=(2, 3, 4), keepdims=True) + 1e-8)
        w = w * demod
    pad = module.padding
    outs = []
    for b in range(B):
        outs.append(jax.lax.conv_general_dilated(
            x[b:b + 1], w[b], window_strides=(1, 1),
            padding=[(pad, pad), (pad, pad)],
            dimension_numbers=('NCHW', 'OIHW', 'NCHW'),
            precision=jax.lax.Precision.HIGHEST))
    return jnp.concatenate(outs, axis=0)


if __name__ == "__main__":
    key = jax.random.PRNGKey(0)
    k_x, k_s, k_p = jax.random.split(key, 3)

    B, IC, OC, K, SD, H = 2, 4, 8, 3, 8, 16
    x = jax.random.normal(k_x, (B, IC, H, H), dtype=jnp.float32)
    style = jax.random.normal(k_s, (B, SD), dtype=jnp.float32)

    module = ModulatedConv2dPallas(IC, OC, K, SD, demodulate=True, key=k_p)

    out = jax.block_until_ready(module(x, style))
    ref = jax.block_until_ready(reference_forward(module, x, style))

    assert out.shape == (B, OC, H, H), out.shape
    max_err = float(jnp.max(jnp.abs(out - ref)))
    if not bool(jnp.allclose(out, ref, atol=2e-2, rtol=2e-2)):
        raise AssertionError(f"mismatch vs reference, max abs err = {max_err}")
    print("KERNEL_OK")
</pallas_src>

<mosaic_0001>
module attributes {stable_mosaic.version = 11 : i64} {
  func.func @_modconv_kernel(%arg0: i32, %arg1: i32, %arg2: i32, %arg3: i32, %arg4: memref<1x256x128xbf16, #tpu.memory_space<vmem>>, %arg5: memref<1x128x128xbf16, #tpu.memory_space<vmem>>, %arg6: memref<1x256x128xf32, #tpu.memory_space<vmem>>) attributes {dimension_semantics = [#tpu.dimension_semantics<parallel>, #tpu.dimension_semantics<parallel>, #tpu.dimension_semantics<parallel>, #tpu.dimension_semantics<arbitrary>], iteration_bounds = array<i64: 2, 1, 1, 1>, scalar_prefetch = 0 : i64, scratch_operands = 0 : i64, tpu.core_type = #tpu.core_type<tc>, window_params = [{transform_indices = @transform_0, window_bounds = array<i64: 1, 256, 128>}, {transform_indices = @transform_1, window_bounds = array<i64: 1, 128, 128>}, {transform_indices = @transform_2, window_bounds = array<i64: 1, 256, 128>}]} {
    %c0 = arith.constant 0 : index
    %c0_0 = arith.constant 0 : index
    %c0_1 = arith.constant 0 : index
    %0 = vector.load %arg4[%c0, %c0_0, %c0_1] : memref<1x256x128xbf16, #tpu.memory_space<vmem>>, vector<1x256x128xbf16>
    %1 = vector.shape_cast %0 : vector<1x256x128xbf16> to vector<256x128xbf16>
    %c0_2 = arith.constant 0 : index
    %c0_3 = arith.constant 0 : index
    %c0_4 = arith.constant 0 : index
    %2 = vector.load %arg5[%c0_2, %c0_3, %c0_4] : memref<1x128x128xbf16, #tpu.memory_space<vmem>>, vector<1x128x128xbf16>
    %3 = vector.shape_cast %2 : vector<1x128x128xbf16> to vector<128x128xbf16>
    %cst = arith.constant dense<0.000000e+00> : vector<256x128xf32>
    %4 = tpu.matmul %1, %3, %cst {dimension_numbers = #tpu.dot_dimension_numbers<[1], [0], [0], [1], [0, 0, 1, 1], [], []>} : vector<256x128xbf16>, vector<128x128xbf16>, vector<256x128xf32> -> vector<256x128xf32>
    %c0_i32 = arith.constant 0 : i32
    %5 = arith.cmpi eq, %arg3, %c0_i32 : i32
    %6 = arith.extui %5 : i1 to i32
    %c0_i32_5 = arith.constant 0 : i32
    %7 = arith.cmpi ne, %6, %c0_i32_5 : i32
    scf.if %7 {
      %c0_8 = arith.constant 0 : index
      %c0_9 = arith.constant 0 : index
      %c0_10 = arith.constant 0 : index
      %11 = vector.load %arg6[%c0_8, %c0_9, %c0_10] : memref<1x256x128xf32, #tpu.memory_space<vmem>>, vector<1x256x128xf32>
      %12 = vector.shape_cast %11 : vector<1x256x128xf32> to vector<256x128xf32>
      %13 = vector.shape_cast %4 : vector<256x128xf32> to vector<1x256x128xf32>
      tpu.vector_store %arg6[%c0_8, %c0_9, %c0_10], %13 {strides = array<i32>} : memref<1x256x128xf32, #tpu.memory_space<vmem>>, vector<1x256x128xf32>,
    } else {
    }
    %c0_i32_6 = arith.constant 0 : i32
    %8 = arith.cmpi sgt, %arg3, %c0_i32_6 : i32
    %9 = arith.extui %8 : i1 to i32
    %c0_i32_7 = arith.constant 0 : i32
    %10 = arith.cmpi ne, %9, %c0_i32_7 : i32
    scf.if %10 {
      %c0_8 = arith.constant 0 : index
      %c0_9 = arith.constant 0 : index
      %c0_10 = arith.constant 0 : index
      %11 = vector.load %arg6[%c0_8, %c0_9, %c0_10] : memref<1x256x128xf32, #tpu.memory_space<vmem>>, vector<1x256x128xf32>
      %12 = vector.shape_cast %11 : vector<1x256x128xf32> to vector<256x128xf32>
      %13 = arith.addf %12, %4 : vector<256x128xf32>
      %c0_11 = arith.constant 0 : index
      %c0_12 = arith.constant 0 : index
      %c0_13 = arith.constant 0 : index
      %14 = vector.load %arg6[%c0_11, %c0_12, %c0_13] : memref<1x256x128xf32, #tpu.memory_space<vmem>>, vector<1x256x128xf32>
      %15 = vector.shape_cast %14 : vector<1x256x128xf32> to vector<256x128xf32>
      %16 = vector.shape_cast %13 : vector<256x128xf32> to vector<1x256x128xf32>
      tpu.vector_store %arg6[%c0_11, %c0_12, %c0_13], %16 {strides = array<i32>} : memref<1x256x128xf32, #tpu.memory_space<vmem>>, vector<1x256x128xf32>,
    } else {
    }
    return
  }
  func.func @transform_0(%arg0: i32, %arg1: i32, %arg2: i32, %arg3: i32) -> (i32, i32, i32) {
    %c0_i32 = arith.constant 0 : i32
    return %arg0, %arg1, %arg3 : i32, i32, i32
  }
  func.func @transform_1(%arg0: i32, %arg1: i32, %arg2: i32, %arg3: i32) -> (i32, i32, i32) {
    %c0_i32 = arith.constant 0 : i32
    return %arg0, %arg3, %arg2 : i32, i32, i32
  }
  func.func @transform_2(%arg0: i32, %arg1: i32, %arg2: i32, %arg3: i32) -> (i32, i32, i32) {
    %c0_i32 = arith.constant 0 : i32
    return %arg0, %arg1, %arg2 : i32, i32, i32
  }
}

</mosaic_0001>

<bundles_post_ra>
// kernel: tpu_custom_call.1
= control target key start
LH: loop header
LB: loop body
LE: loop exit
PB: predicated region body
PF: predicated region fallthrough
CT: control target
= control target key end

     0   :  { %7 = vsyncpa [#allocation3], 0  ;;  %s1511_s0 = inlined_call_operand.hbm [shape: bf16[2,256,128], index: 0, kind: input, shape index: {}]   ;;  %s1512_s1 = inlined_call_operand.hbm [shape: bf16[2,128,128], index: 1, kind: input, shape index: {}]   ;;  %s1513_s2 = inlined_call_operand.hbm [shape: f32[2,256,128], index: 2, kind: output, shape index: {}]  }
   0x1   :  { %9 = vsyncpa [#allocation3 + $0x1], 0 }
   0x2   :  { %10 = vsyncpa [#allocation6], 0 }
   0x3   :  { %12 = vsyncpa [#allocation6 + $0x1], 0 }
   0x4   :  { %13 = vsyncpa [#allocation4], 0 }
   0x5   :  { %15 = vsyncpa [#allocation4 + $0x1], 0  ;;  %s1271_s9 = smov 0   ;;  %s1273_s10 = smov 0  }
   0x6   :  { %s1275_s11 = smov 0   ;;  %s1277_s12 = smov 0  }
   0x7   :  { %s1279_s13 = smov 0   ;;  %s1281_s14 = smov 0  }
   0x8 LB: > { %s878_s15 = sadd.s32 4294967295, %s1247_s14   ;;  %s879_s16 = sadd.s32 4294967294, %s1247_s14   ;;  %s1247_s14 = sphi %s1281_s14, %s21_s14   ;;  %s1243_s13 = sphi %s1279_s13, %s1524_s13   ;;  %s1239_s12 = sphi %s1277_s12, %s1523_s12   ;;  %s1235_s11 = sphi %s1275_s11, %s1522_s11   ;;  %s1231_s10 = sphi %s1273_s10, %s1521_s10   ;;  %s1227_s9 = sphi %s1271_s9, %s1520_s9  }
   0x9   : > { %s47_s17 = sadd.s32 1, %s1243_s13  ;;  %s58_s18 = sadd.s32 1, %s1235_s11 }
   0xa   : > { %p49_p0 = scmp.ge.s32.totalorder %s47_s17, 2  ;;  %p65_p1 = scmp.ne.s32.totalorder %s1235_s11, %s1231_s10 }
   0xb   : > { %p66_p2 = scmp.eq.s32.totalorder %s1247_s14, 0  ;;  %p71_p3 = scmp.ne.s32.totalorder %s1231_s10, %s1227_s9 }
   0xc   : > { %s1526_s17 = smov (%p49_p0, %s47_s17), 0  ;;  %p72_p5 = scmp.eq.s32.totalorder %s878_s15, 0 }
   0xd   : > { %p1312_p4 = por %p66_p2, %p65_p1  ;;  %s51_s20 = ssub.s32 %s1243_s13, %s1526_s17 }
   0xe   : > { %p129_p6 = scmp.eq.s32.totalorder %s878_s15, 1  ;;  %p56_p7 = scmp.eq.s32.totalorder %s51_s20, 0 }
   0xf   : > { %p1318_p8 = por %p72_p5, %p71_p3  ;;  %p135_p10 = scmp.eq.s32.totalorder %s879_s16, 1 }
  0x10   : > { %p1322_p9 = por %p129_p6, %p65_p1  ;;  %p881_p12 = scmp.ge.s32.totalorder %s1247_s14, 2 }
  0x11   : > { %s1327_s23 = scalar_select %p56_p7, %s1235_s11, %s58_s18  }
  0x12   : > { %p1329_p11 = por %p135_p10, %p71_p3  ;;  %p1029_p13 = scmp.lt.s32.totalorder %s1247_s14, 2 }
  0x13   : > { %s1336_s25 = sand.u32 1, %s1235_s11   ;;  %s921_s27 = sshll.u32 %s1243_s13, 11 }
  0x14   : > { %s882_s26 = sshll.u32 %s1336_s25, 7  ;;  %s168_s30 = scalar_lea.hbm %s1511_s0, %s921_s27 }
  0x15   : > { %s159_s3 = scalar_lea.vmem [#allocation2], %s882_s26  ;;  %p1345_p0 = pnand %p1029_p13, %p1312_p4 }
  0x16   : > { %s169_s4 = sshll.u32 %s159_s3, 4  ;;  %p888_p1 = scmp.ge.s32.totalorder %s1247_s14, 1  ;;  %s170_s4 = int_to_ptr.vmem [resolvable:$true] %s169_s4 }
  0x17   : > { %s156_s6 = scalar_lea.sflag [#allocation3], %s1336_s25  ;;  %p1109_p2 = pneg %p1345_p0 }
  0x18   : > { %s1120_s7 = scalar_lea.vmem %s170_s4, 2048  ;;  %s1249_s8 = smov [#allocation2]  }
  0x19   : > { %p1121_p3 = scmp.ne.s32.totalorder %s170_s4, %s1120_s7  ;;  %s1125_s15 = sshll.u32 %s1249_s8, 4  ;;  %s1126_s15 = int_to_ptr.vmem [resolvable:$false] %s1125_s15 }
  0x1a   : > { %s1127_s16 = scalar_lea.vmem %s1126_s15, 4096  ;;  %p1128_p4 = scmp.lt.s32.totalorder %s170_s4, %s1126_s15 }
  0x1b   : > { %p1123_p5 = pnand %p1121_p3, %p1109_p2  ;;  %p1129_p7 = scmp.lt.s32.totalorder %s1127_s16, %s1120_s7 }
  0x1d   : > { %p1124_p6 = pneg %p1123_p5  ;;  %p1130_p10 = por %p1129_p7, %p1128_p4 }
  0x1f   : > { %p1131_p13 = pnand %p1130_p10, %p1124_p6 }
  0x21   : > { %1134 = shalt.err (!%p1131_p13)
}
  0x22   : > { %s1250_s18 = smov 64   ;;  %s1251_s19 = smov 4  }
  0x23   : > { %1021 = dma.hbm_to_vmem [thread:$0]  (!%p1345_p0), %s168_s30, 2048, %s170_s4, %s156_s6, %s1250_s18, %s1250_s18, %s1251_s19  }
  0x24   : > { %p201_p3 = scmp.lt.s32.totalorder %s1247_s14, 3  ;;  %s885_s20 = sshll.u32 %s1336_s25, 6 }
  0x25   : > { %s922_s26 = sshll.u32 %s1243_s13, 10  ;;  %s183_s7 = scalar_lea.vmem [#allocation5], %s885_s20 }
  0x26   : > { %p1363_p5 = pnand %p888_p1, %p201_p3  ;;  %s192_s3 = scalar_lea.hbm %s1512_s1, %s922_s26 }
  0x27   : > { %s193_s8 = sshll.u32 %s183_s7, 4  ;;  %s180_s15 = scalar_lea.sflag [#allocation6], %s1336_s25  ;;  %s194_s8 = int_to_ptr.vmem [resolvable:$true] %s193_s8 }
  0x28   : > { %s1148_s16 = scalar_lea.vmem %s194_s8, 1024  ;;  %s1252_s30 = smov [#allocation5]  }
  0x29   : > { %p1149_p6 = scmp.ne.s32.totalorder %s194_s8, %s1148_s16  ;;  %s1153_s4 = sshll.u32 %s1252_s30, 4  ;;  %s1154_s4 = int_to_ptr.vmem [resolvable:$false] %s1153_s4 }
  0x2a   : > { %s1155_s6 = scalar_lea.vmem %s1154_s4, 2048  ;;  %p1156_p1 = scmp.lt.s32.totalorder %s194_s8, %s1154_s4 }
  0x2b   : > { %p1151_p4 = pnand %p1149_p6, %p1109_p2  ;;  %p1157_p10 = scmp.lt.s32.totalorder %s1155_s6, %s1148_s16 }
  0x2d   : > { %p1152_p7 = pneg %p1151_p4  ;;  %p1158_p13 = por %p1157_p10, %p1156_p1 }
  0x2f   : > { %p1159_p3 = pnand %p1158_p13, %p1152_p7 }
  0x31   : > { %1162 = shalt.err (!%p1159_p3)
}
  0x32   : > { %1024 = dma.hbm_to_vmem [thread:$0]  (!%p1345_p0), %s192_s3, 1024, %s194_s8, %s180_s15, %s1250_s18, %s1250_s18, %s1251_s19  }
  0x33   : > { %205 = sbr.rel (%p1363_p5) target bundleno = 330 (0x14a), region = 28  ;;  %s1379_s25 = sand.u32 (!%p1363_p5), 1, %s1231_s10  }
  0x34   : > { %s889_s20 = sshll.u32 (!%p1363_p5), %s1379_s25, 7  ;;  %s208_s26 = scalar_lea.sflag (!%p1363_p5), [#allocation3], %s1379_s25 }
  0x35   : > { %s1383_s28 = scalar_lea.vmem (!%p1363_p5), [#allocation2], %s889_s20 }
  0x38   : > { %1214 = dma.done.wait (%p1318_p8), %s208_s26, 2048  }
  0x39   : > { %1216 = vsyncadd (%p1318_p8), %s208_s26, 4294965248  ;;  %s890_s5 = sshll.u32 %s1379_s25, 6  ;;  %s217_s18 = scalar_lea.sflag [#allocation6], %s1379_s25 }
  0x3a   : > { %s1391_s19 = scalar_lea.vmem [#allocation5], %s890_s5 }
  0x3b   : > { %1218 = dma.done.wait (%p1318_p8), %s217_s18, 1024  }
  0x3c   : > { %1220 = vsyncadd (%p1318_p8), %s217_s18, 4294966272  ;;  %v1083_v0 = vld [vmem:[%s1391_s19 + $0x38] sm:$0xff]   ;;  %v1084_v1 = vld [vmem:[%s1391_s19 + $0x30] sm:$0xff]   ;;  %s891_s21 = sshll.u32 %s1379_s25, 8  ;;  %s923_s29 = sshll.u32 %s1239_s12, 12 }
  0x3d   : > { %948 = vmatprep.subr.bf16.mxu0 %v1083_v0  ;;  %996 = vmatprep.subr.bf16.mxu1 %v1083_v0  ;;  %v1085_v2 = vld [vmem:[%s1391_s19 + $0x28] sm:$0xff]   ;;  %v1086_v3 = vld [vmem:[%s1391_s19 + $0x20] sm:$0xff]   ;;  %v1087_v6 = vld [vmem:[%s1391_s19 + $0x18] sm:$0xff]   ;;  %s1422_s27 = scalar_lea.vmem [#allocation7], %s891_s21  ;;  %s1457_s15 = scalar_lea.hbm %s1513_s2, %s923_s29 }
  0x3e   : > { %949 = vmatpush3.bf16.msra.mxu0 %v1083_v0  ;;  %1004 = vmatpush3.bf16.msra.mxu1 %v1083_v0  ;;  %v1091_v4 = vld [vmem:[%s1383_s28] sm:$0xff]   ;;  %v1088_v7 = vld [vmem:[%s1391_s19 + $0x10] sm:$0xff]   ;;  %v1089_v8 = vld [vmem:[%s1391_s19 + $0x8] sm:$0xff]   ;;  %s756_s3 = sshll.u32 %s1422_s27, 4  ;;  %s740_s12 = scalar_lea.sflag [#allocation4], %s1379_s25  ;;  %s1459_s3 = int_to_ptr.vmem [resolvable:$true] %s756_s3 }
  0x3f   : > { %950 = vmatprep.subr.bf16.mxu0 %v1084_v1  ;;  %997 = vmatprep.subr.bf16.mxu1 %v1084_v1  ;;  %v1092_v5 = vld [vmem:[%s1383_s28 + $0x40] sm:$0xff]   ;;  %v1093_v10 = vld [vmem:[%s1383_s28 + $0x8] sm:$0xff]   ;;  %v1095_v12 = vld [vmem:[%s1383_s28 + $0x10] sm:$0xff]   ;;  %s1163_s16 = scalar_lea.vmem %s1459_s3, 4096  ;;  %s1253_s30 = smov [#allocation7]  }
  0x40   : > { %964 = vmatprep.mubr.bf16.mxu0 %v1091_v4  ;;  %980 = vmatprep.mubr.bf16.mxu1 %v1092_v5  ;;  %v1090_v9 = vld [vmem:[%s1391_s19] sm:$0xff]   ;;  %v1094_v11 = vld [vmem:[%s1383_s28 + $0x48] sm:$0xff]   ;;  %v1096_v13 = vld [vmem:[%s1383_s28 + $0x50] sm:$0xff]   ;;  %p1164_p8 = scmp.ne.s32.totalorder %s1459_s3, %s1163_s16  ;;  %s1167_s4 = sshll.u32 %s1253_s30, 4  ;;  %s1168_s4 = int_to_ptr.vmem [resolvable:$false] %s1167_s4 }
  0x41   : > { %v1097_v14 = vld [vmem:[%s1383_s28 + $0x18] sm:$0xff]   ;;  %v1099_v16 = vld [vmem:[%s1383_s28 + $0x20] sm:$0xff]   ;;  %v1101_v18 = vld [vmem:[%s1383_s28 + $0x28] sm:$0xff]   ;;  %s1169_s6 = scalar_lea.vmem %s1168_s4, 8192  ;;  %p1170_p5 = scmp.lt.s32.totalorder %s1459_s3, %s1168_s4 }
  0x42   : > { %951 = vmatpush3.bf16.msra.mxu0 %v1084_v1  ;;  %1005 = vmatpush3.bf16.msra.mxu1 %v1084_v1  ;;  %v1098_v15 = vld [vmem:[%s1383_s28 + $0x58] sm:$0xff]   ;;  %v1100_v17 = vld [vmem:[%s1383_s28 + $0x60] sm:$0xff]   ;;  %v1102_v19 = vld [vmem:[%s1383_s28 + $0x68] sm:$0xff]   ;;  %p1165_p0 = pnand %p1164_p8, %p1322_p9  ;;  %p1171_p6 = scmp.lt.s32.totalorder %s1169_s6, %s1163_s16 }
  0x43   : > { %952 = vmatprep.subr.bf16.mxu0 %v1085_v2  ;;  %998 = vmatprep.subr.bf16.mxu1 %v1085_v2  ;;  %v1103_v20 = vld [vmem:[%s1383_s28 + $0x30] sm:$0xff]   ;;  %v1105_v22 = vld [vmem:[%s1383_s28 + $0x38] sm:$0xff]  }
  0x44   : > { %v1104_v21 = vld [vmem:[%s1383_s28 + $0x70] sm:$0xff]   ;;  %v1106_v23 = vld [vmem:[%s1383_s28 + $0x78] sm:$0xff]   ;;  %p1166_p2 = pneg %p1165_p0  ;;  %p1172_p4 = por %p1171_p6, %p1170_p5 }
  0x46   : > { %953 = vmatpush3.bf16.msra.mxu0 %v1085_v2  ;;  %1006 = vmatpush3.bf16.msra.mxu1 %v1085_v2  ;;  %p1173_p7 = pnand %p1172_p4, %p1166_p2 }
  0x47   : > { %954 = vmatprep.subr.bf16.mxu0 %v1086_v3  ;;  %999 = vmatprep.subr.bf16.mxu1 %v1086_v3 }
  0x4a   : > { %955 = vmatpush3.bf16.msra.mxu0 %v1086_v3  ;;  %1007 = vmatpush3.bf16.msra.mxu1 %v1086_v3 }
  0x4b   : > { %956 = vmatprep.subr.bf16.mxu0 %v1087_v6  ;;  %1000 = vmatprep.subr.bf16.mxu1 %v1087_v6 }
  0x4e   : > { %957 = vmatpush3.bf16.msra.mxu0 %v1087_v6  ;;  %1008 = vmatpush3.bf16.msra.mxu1 %v1087_v6 }
  0x4f   : > { %958 = vmatprep.subr.bf16.mxu0 %v1088_v7  ;;  %1001 = vmatprep.subr.bf16.mxu1 %v1088_v7 }
  0x52   : > { %959 = vmatpush3.bf16.msra.mxu0 %v1088_v7  ;;  %1009 = vmatpush3.bf16.msra.mxu1 %v1088_v7 }
  0x53   : > { %960 = vmatprep.subr.bf16.mxu0 %v1089_v8  ;;  %1002 = vmatprep.subr.bf16.mxu1 %v1089_v8 }
  0x56   : > { %961 = vmatpush3.bf16.msra.mxu0 %v1089_v8  ;;  %1010 = vmatpush3.bf16.msra.mxu1 %v1089_v8 }
  0x57   : > { %962 = vmatprep.subr.bf16.mxu0 %v1090_v9  ;;  %1003 = vmatprep.subr.bf16.mxu1 %v1090_v9 }
  0x5a   : > { %963 = vmatpush3.bf16.msra.mxu0 %v1090_v9  ;;  %1011 = vmatpush3.bf16.msra.mxu1 %v1090_v9 }
  0x5d   : > { %965 = vmatmul.mubr.bf16.vlgmr.msra.gmra.mxu0 %v1093_v10  ;;  %981 = vmatmul.mubr.bf16.vlgmr.msra.gmra.mxu1 %v1094_v11 }
  0x5e   : > { %968 = vmatprep.mubr.bf16.mxu0 %v1095_v12  ;;  %984 = vmatprep.mubr.bf16.mxu1 %v1096_v13 }
  0x65   : > { %969 = vmatmul.mubr.bf16.gmra.mxu0 %v1097_v14  ;;  %985 = vmatmul.mubr.bf16.gmra.mxu1 %v1098_v15 }
  0x66   : > { %972 = vmatprep.mubr.bf16.mxu0 %v1099_v16  ;;  %988 = vmatprep.mubr.bf16.mxu1 %v1100_v17 }
  0x6d   : > { %973 = vmatmul.mubr.bf16.gmra.mxu0 %v1101_v18  ;;  %989 = vmatmul.mubr.bf16.gmra.mxu1 %v1102_v19 }
  0x6e   : > { %976 = vmatprep.mubr.bf16.mxu0 %v1103_v20  ;;  %992 = vmatprep.mubr.bf16.mxu1 %v1104_v21 }
  0x75   : > { %977 = vmatmul.mubr.bf16.gmra.mxu0 %v1105_v22  ;;  %993 = vmatmul.mubr.bf16.gmra.mxu1 %v1106_v23 }
 0x11d   : > { %v966_v24 = vpop.f32.mrf.mxu0  ;;  %v982_v25 = vpop.f32.mrf.mxu1 }
 0x11e   : > { %609 = vst [vmem:[%s1422_s27 + $0x10] sm:$0xff] %v966_v24  ;;  %625 = vst [vmem:[%s1422_s27 + $0x90] sm:$0xff] %v982_v25 }
 0x11f   : > { %v476_v26 = vpop.f32.mrf.mxu0  ;;  %v540_v27 = vpop.f32.mrf.mxu1 }
 0x120   : > { %607 = vst [vmem:[%s1422_s27] sm:$0xff] %v476_v26  ;;  %623 = vst [vmem:[%s1422_s27 + $0x80] sm:$0xff] %v540_v27 }
 0x121   : > { %v967_v28 = vpop.f32.mrf.mxu0  ;;  %v983_v29 = vpop.f32.mrf.mxu1 }
 0x122   : > { %610 = vst [vmem:[%s1422_s27 + $0x18] sm:$0xff] %v967_v28  ;;  %626 = vst [vmem:[%s1422_s27 + $0x98] sm:$0xff] %v983_v29 }
 0x123   : > { %v479_v30 = vpop.f32.mrf.mxu0  ;;  %v543_v31 = vpop.f32.mrf.mxu1 }
 0x124   : > { %608 = vst [vmem:[%s1422_s27 + $0x8] sm:$0xff] %v479_v30  ;;  %624 = vst [vmem:[%s1422_s27 + $0x88] sm:$0xff] %v543_v31 }
 0x125   : > { %v970_v32 = vpop.f32.mrf.mxu0  ;;  %v986_v33 = vpop.f32.mrf.mxu1 }
 0x126   : > { %613 = vst [vmem:[%s1422_s27 + $0x30] sm:$0xff] %v970_v32  ;;  %629 = vst [vmem:[%s1422_s27 + $0xb0] sm:$0xff] %v986_v33 }
 0x127   : > { %v492_v34 = vpop.f32.mrf.mxu0  ;;  %v556_v35 = vpop.f32.mrf.mxu1 }
 0x128   : > { %611 = vst [vmem:[%s1422_s27 + $0x20] sm:$0xff] %v492_v34  ;;  %627 = vst [vmem:[%s1422_s27 + $0xa0] sm:$0xff] %v556_v35 }
 0x129   : > { %v971_v36 = vpop.f32.mrf.mxu0  ;;  %v987_v37 = vpop.f32.mrf.mxu1 }
 0x12a   : > { %614 = vst [vmem:[%s1422_s27 + $0x38] sm:$0xff] %v971_v36  ;;  %630 = vst [vmem:[%s1422_s27 + $0xb8] sm:$0xff] %v987_v37 }
 0x12b   : > { %v495_v38 = vpop.f32.mrf.mxu0  ;;  %v559_v39 = vpop.f32.mrf.mxu1 }
 0x12c   : > { %612 = vst [vmem:[%s1422_s27 + $0x28] sm:$0xff] %v495_v38  ;;  %628 = vst [vmem:[%s1422_s27 + $0xa8] sm:$0xff] %v559_v39 }
 0x12d   : > { %v974_v40 = vpop.f32.mrf.mxu0  ;;  %v990_v41 = vpop.f32.mrf.mxu1 }
 0x12e   : > { %617 = vst [vmem:[%s1422_s27 + $0x50] sm:$0xff] %v974_v40  ;;  %633 = vst [vmem:[%s1422_s27 + $0xd0] sm:$0xff] %v990_v41 }
 0x12f   : > { %v508_v42 = vpop.f32.mrf.mxu0  ;;  %v572_v43 = vpop.f32.mrf.mxu1 }
 0x130   : > { %615 = vst [vmem:[%s1422_s27 + $0x40] sm:$0xff] %v508_v42  ;;  %631 = vst [vmem:[%s1422_s27 + $0xc0] sm:$0xff] %v572_v43 }
 0x131   : > { %v975_v44 = vpop.f32.mrf.mxu0  ;;  %v991_v45 = vpop.f32.mrf.mxu1 }
 0x132   : > { %618 = vst [vmem:[%s1422_s27 + $0x58] sm:$0xff] %v975_v44  ;;  %634 = vst [vmem:[%s1422_s27 + $0xd8] sm:$0xff] %v991_v45 }
 0x133   : > { %v511_v46 = vpop.f32.mrf.mxu0  ;;  %v575_v47 = vpop.f32.mrf.mxu1 }
 0x134   : > { %616 = vst [vmem:[%s1422_s27 + $0x48] sm:$0xff] %v511_v46  ;;  %632 = vst [vmem:[%s1422_s27 + $0xc8] sm:$0xff] %v575_v47 }
 0x135   : > { %v978_v48 = vpop.f32.mrf.mxu0  ;;  %v994_v49 = vpop.f32.mrf.mxu1 }
 0x136   : > { %621 = vst [vmem:[%s1422_s27 + $0x70] sm:$0xff] %v978_v48  ;;  %637 = vst [vmem:[%s1422_s27 + $0xf0] sm:$0xff] %v994_v49 }
 0x137   : > { %v524_v50 = vpop.f32.mrf.mxu0  ;;  %v588_v51 = vpop.f32.mrf.mxu1 }
 0x138   : > { %619 = vst [vmem:[%s1422_s27 + $0x60] sm:$0xff] %v524_v50  ;;  %635 = vst [vmem:[%s1422_s27 + $0xe0] sm:$0xff] %v588_v51 }
 0x139   : > { %v979_v52 = vpop.f32.mrf.mxu0  ;;  %v995_v53 = vpop.f32.mrf.mxu1 }
 0x13a   : > { %622 = vst [vmem:[%s1422_s27 + $0x78] sm:$0xff] %v979_v52  ;;  %638 = vst [vmem:[%s1422_s27 + $0xf8] sm:$0xff] %v995_v53 }
 0x13b   : > { %v527_v54 = vpop.f32.mrf.mxu0  ;;  %v591_v55 = vpop.f32.mrf.mxu1 }
 0x13c   : > { %620 = vst [vmem:[%s1422_s27 + $0x68] sm:$0xff] %v527_v54  ;;  %636 = vst [vmem:[%s1422_s27 + $0xe8] sm:$0xff] %v591_v55 }
 0x13d   : > { %1176 = shalt.err (!%p1173_p7)
}
 0x13e   : > { %s1177_s20 = scalar_lea.hbm %s1457_s15, 4096  ;;  %s1181_s5 = scalar_lea.hbm %s1513_s2, 8192 }
 0x13f   : > { %p1178_p1 = scmp.ne.s32.totalorder %s1457_s15, %s1177_s20  ;;  %p1182_p3 = scmp.lt.s32.totalorder %s1457_s15, %s1513_s2 }
 0x140   : > { %p1183_p8 = scmp.lt.s32.totalorder %s1181_s5, %s1177_s20 }
 0x141   : > { %p1179_p10 = pnand %p1178_p1, %p1322_p9 }
 0x142   : > { %p1184_p0 = por %p1183_p8, %p1182_p3 }
 0x143   : > { %p1180_p13 = pneg %p1179_p10 }
 0x145   : > { %p1185_p2 = pnand %p1184_p0, %p1180_p13 }
 0x147   : > { %1188 = shalt.err (!%p1185_p2)
}
 0x148   : > { %s1254_s21 = smov 128   ;;  %s1255_s27 = smov 8  }
 0x149   : > { %1016 = dma.vmem_to_hbm [thread:$0]  (%p1322_p9), %s1459_s3, 4096, %s1457_s15, %s740_s12, %s1254_s21, %s1254_s21, %s1255_s27  }
 0x14a PF: > { %s771_s29 = sand.u32 1, %s1227_s9   ;;  %p1026_p5 = pnand %p881_p12, %p1329_p11 }
 0x14b   : > { %s772_s7 = scalar_lea.sflag [#allocation4], %s771_s29 }
 0x14c   : > { %p1027_p6 = pneg %p1026_p5 }
 0x14e   : > { %1222 = dma.done.wait (%p1027_p6), %s772_s7, 4096  }
 0x14f   : > { %1224 = vsyncadd (%p1027_p6), %s772_s7, 4294963200  ;;  %s21_s14 = sadd.s32 1, %s1247_s14   ;;  %s1520_s9 = smov %s1231_s10 }
 0x150   : > { %p18_p4 = scmp.ge.s32.totalorder %s21_s14, 4   ;;  %s1521_s10 = smov %s1235_s11 }
 0x151   : > { %s1522_s11 = smov %s1327_s23  ;;  %s1523_s12 = smov %s1243_s13 }
 0x152   : > { %s1524_s13 = smov %s1526_s17  ;;  %20 = sbr.rel (!%p18_p4) target bundleno = 8 (0x8), region = 94 }
 0x157   :  { %777 = vsyncpa [#allocation3], 1 }
 0x158   :  { %779 = vsyncpa [#allocation3 + $0x1], 1 }
 0x159   :  { %780 = vsyncpa [#allocation6], 1 }
 0x15a   :  { %782 = vsyncpa [#allocation6 + $0x1], 1 }
 0x15b   :  { %783 = vsyncpa [#allocation4], 1 }
 0x15c   :  { %785 = vsyncpa [#allocation4 + $0x1], 1 }

</bundles_post_ra>
